<compile_context>
chip_gen: v5e
topology: v5e:2x2
jax: 0.10.0
libtpu: 0.0.40
codegen_flags: <defaults>
</compile_context>

<pallas_src>
import jax
import jax.numpy as jnp
from jax.experimental import pallas as pl
from jax.experimental.pallas import tpu as pltpu


def cascade_kernel(x_ref, w1_ref, b1_ref, w2_ref, b2_ref, out_ref, mask_ref):
    # x_ref:   (Cin, TP)   VMEM tile (channel-major, pixels on the lane axis)
    # w1_ref:  (Cin*C1,)   f32 SMEM (flattened row-major [k, c])
    # b1_ref:  (C1,)       f32 SMEM
    # w2_ref:  (Cin*C2,)   f32 SMEM
    # b2_ref:  (C2,)       f32 SMEM
    # out_ref: (C2, TP)    f32 VMEM
    # mask_ref:(1,  TP)    i8  VMEM
    cin = x_ref.shape[0]
    c1 = b1_ref.shape[0]
    c2 = b2_ref.shape[0]

    # Hoist every SMEM scalar read once per kernel body (JAX does not CSE the
    # scalar -> vector splats, so bind them a single time and reuse).
    w1 = [[w1_ref[k * c1 + c] for c in range(c1)] for k in range(cin)]
    b1 = [b1_ref[c] for c in range(c1)]
    w2 = [[w2_ref[k * c2 + c] for c in range(c2)] for k in range(cin)]
    b2 = [b2_ref[c] for c in range(c2)]

    def row(k):
        # Lane-dense (1, TP) read straight from the ref (no whole-block
        # materialization); upcast to f32 on the VPU if the input is narrower.
        return x_ref[k:k + 1, :].astype(jnp.float32)

    def conv_col(wcol, bias=None):
        # logit = sum_k wcol[k] * x[k, :] (+ bias)  -> (1, TP) pure VPU FMAs.
        acc = row(0) * wcol[0]
        for k in range(1, cin):
            acc = acc + row(k) * wcol[k]
        return acc if bias is None else acc + bias

    # ---- base_model logits + argmax==0 road mask ---------------------------
    # torch:  pred = logits.max(1)[1]; road = (pred == 0)
    # argmax==0  <=>  logit_0 >= max(logit_1 .. logit_{C1-1})  (first-index ties)
    l0 = conv_col([w1[k][0] for k in range(cin)], b1[0])
    if c1 > 1:
        lrest = conv_col([w1[k][1] for k in range(cin)], b1[1])
        for c in range(2, c1):
            lrest = jnp.maximum(
                lrest, conv_col([w1[k][c] for k in range(cin)], b1[c]))
        road = l0 >= lrest                           # (1, TP) bool
    else:
        road = jnp.ones_like(l0, dtype=bool)

    mask_ref[...] = road.astype(mask_ref.dtype)      # 1 byte/pixel writeback

    # ---- fine_grained_model(input * road_mask) -----------------------------
    # out_c = road * (sum_k w2[k,c] * x[k]) + b2[c]  -- identical math, no
    # masked-input temporary, no mask broadcast across channels.
    roadf = road.astype(jnp.float32)
    for c in range(c2):
        raw = conv_col([w2[k][c] for k in range(cin)])
        out_ref[c:c + 1, :] = roadf * raw + b2[c]


def _pick_tile_p(P, max_tile_p):
    """Largest lane-aligned (multiple-of-128) tile up to max_tile_p."""
    p128 = ((P + 127) // 128) * 128
    cap = max(128, max_tile_p - (max_tile_p % 128))
    return max(128, min(cap, p128))


def cascade_net(x_nchw, w1, b1, w2, b2, *, max_tile_p=32768):
    """x_nchw: (1, Cin, H, W).

    Returns (fine_logits (1, C2, H, W) f32, road_mask (1, H, W) i8: 1=road).
    """
    N, Cin, H, W = x_nchw.shape
    assert N == 1, "cascadeNet forward assumes batch size 1 (uses squeeze(0))"
    P = H * W
    C1 = w1.shape[1]
    C2 = w2.shape[1]
    tile_p = _pick_tile_p(P, max_tile_p)
    grid = (pl.cdiv(P, tile_p),)   # partial last tile handled by Pallas

    # Free, transpose-less view: NCHW (1,Cin,H,W) -> channel-major (Cin, P).
    # No dtype cast here: the kernel upcasts per-row after the DMA, so
    # bf16/fp8 activations are read from HBM at native width.
    x_cp = x_nchw.reshape(Cin, P)
    w1f = jnp.asarray(w1, jnp.float32).reshape(-1)   # row-major [k, c]
    b1f = jnp.asarray(b1, jnp.float32).reshape(-1)
    w2f = jnp.asarray(w2, jnp.float32).reshape(-1)
    b2f = jnp.asarray(b2, jnp.float32).reshape(-1)

    out, mask = pl.pallas_call(
        cascade_kernel,
        out_shape=(
            jax.ShapeDtypeStruct((C2, P), jnp.float32),
            jax.ShapeDtypeStruct((1, P), jnp.int8),
        ),
        grid_spec=pltpu.PrefetchScalarGridSpec(
            num_scalar_prefetch=0,
            grid=grid,
            in_specs=[
                pl.BlockSpec((Cin, tile_p), lambda i: (0, i)),
                pl.BlockSpec(memory_space=pltpu.MemorySpace.SMEM),  # w1 scalars
                pl.BlockSpec(memory_space=pltpu.MemorySpace.SMEM),  # b1
                pl.BlockSpec(memory_space=pltpu.MemorySpace.SMEM),  # w2
                pl.BlockSpec(memory_space=pltpu.MemorySpace.SMEM),  # b2
            ],
            out_specs=(
                pl.BlockSpec((C2, tile_p), lambda i: (0, i)),
                pl.BlockSpec((1, tile_p), lambda i: (0, i)),
            ),
        ),
        compiler_params=pltpu.CompilerParams(
            # Shards the pixel-tile axis across both TensorCores on v7x;
            # harmless (near-no-op) on single-TC v5e/v6e.
            dimension_semantics=("parallel",),
            # Big tiles need > v5e's 16 MiB scoped default; 48 MiB still
            # leaves headroom under v7x's 64 MiB physical VMEM.
            vmem_limit_bytes=48 * 1024 * 1024,
        ),
    )(x_cp, w1f, b1f, w2f, b2f)

    # Free views back to the PyTorch output layout.
    fine = out.reshape(1, C2, H, W)      # (1, C2, H, W) f32
    road_mask = mask.reshape(1, H, W)    # (1, H, W) int8, 1=road 0=non-road
    return fine, road_mask


def _reference(x_nchw, w1, b1, w2, b2):
    """Pure-JAX reference of the same forward semantics."""
    _, Cin, H, W = x_nchw.shape
    x_cp = x_nchw.reshape(Cin, H * W).astype(jnp.float32)        # (Cin, P)
    l1 = w1.T @ x_cp + b1[:, None]                                # (C1, P)
    pred = jnp.argmax(l1, axis=0)                                 # (P,)
    road = (pred == 0).astype(jnp.int32)
    xm = x_cp * road[None, :].astype(jnp.float32)
    l2 = w2.T @ xm + b2[:, None]                                  # (C2, P)
    fine = l2.reshape(1, w2.shape[1], H, W)
    return fine, road.reshape(1, H, W)


if __name__ == "__main__":
    key = jax.random.PRNGKey(0)
    k_in, k_w1, k_b1, k_w2, k_b2 = jax.random.split(key, 5)

    # Small shapes: batch=1 (cascadeNet squeezes batch), 3 input channels (RGB),
    # 16x16 spatial, base model -> 2 classes (road / not-road), fine model -> 4.
    N, Cin, H, W = 1, 3, 16, 16
    C1, C2 = 2, 4

    x = jax.random.normal(k_in, (N, Cin, H, W), dtype=jnp.float32)
    w1 = jax.random.normal(k_w1, (Cin, C1), dtype=jnp.float32) * 0.5
    b1 = jax.random.normal(k_b1, (C1,), dtype=jnp.float32) * 0.1
    w2 = jax.random.normal(k_w2, (Cin, C2), dtype=jnp.float32) * 0.5
    b2 = jax.random.normal(k_b2, (C2,), dtype=jnp.float32) * 0.1

    fine, road_mask = cascade_net(x, w1, b1, w2, b2)
    jax.block_until_ready((fine, road_mask))

    ref_fine, ref_mask = _reference(x, w1, b1, w2, b2)
    assert fine.shape == (N, C2, H, W) and road_mask.shape == (N, H, W)
    assert jnp.allclose(fine, ref_fine, atol=1e-5, rtol=1e-5)
    assert jnp.array_equal(road_mask.astype(jnp.int32), ref_mask)

    # TODO(synk): base_model / fine_grained_model are external sub-modules in the
    # original code; they are synthesized here as deterministic 1x1 convs.
    print("KERNEL_OK")
</pallas_src>

<mosaic_0001>
module attributes {stable_mosaic.version = 11 : i64} {
  func.func @cascade_kernel(%arg0: i32, %arg1: memref<3x256xf32, #tpu.memory_space<vmem>>, %arg2: memref<6xf32, #tpu.memory_space<smem>>, %arg3: memref<2xf32, #tpu.memory_space<smem>>, %arg4: memref<12xf32, #tpu.memory_space<smem>>, %arg5: memref<4xf32, #tpu.memory_space<smem>>, %arg6: memref<4x256xf32, #tpu.memory_space<vmem>>, %arg7: memref<1x256xi8, #tpu.memory_space<vmem>>) attributes {dimension_semantics = [#tpu.dimension_semantics<parallel>], iteration_bounds = array<i64: 1>, scalar_prefetch = 0 : i64, scratch_operands = 0 : i64, tpu.core_type = #tpu.core_type<tc>, window_params = [{transform_indices = @transform_0, window_bounds = array<i64: 3, 256>}, {transform_indices = @transform_1, window_bounds = array<i64: 6>}, {transform_indices = @transform_2, window_bounds = array<i64: 2>}, {transform_indices = @transform_3, window_bounds = array<i64: 12>}, {transform_indices = @transform_4, window_bounds = array<i64: 4>}, {transform_indices = @transform_5, window_bounds = array<i64: 4, 256>}, {transform_indices = @transform_6, window_bounds = array<i64: 1, 256>}]} {
    %c0 = arith.constant 0 : index
    %0 = memref.load %arg2[%c0] : memref<6xf32, #tpu.memory_space<smem>>
    %c1 = arith.constant 1 : index
    %1 = memref.load %arg2[%c1] : memref<6xf32, #tpu.memory_space<smem>>
    %c2 = arith.constant 2 : index
    %2 = memref.load %arg2[%c2] : memref<6xf32, #tpu.memory_space<smem>>
    %c3 = arith.constant 3 : index
    %3 = memref.load %arg2[%c3] : memref<6xf32, #tpu.memory_space<smem>>
    %c4 = arith.constant 4 : index
    %4 = memref.load %arg2[%c4] : memref<6xf32, #tpu.memory_space<smem>>
    %c5 = arith.constant 5 : index
    %5 = memref.load %arg2[%c5] : memref<6xf32, #tpu.memory_space<smem>>
    %c0_0 = arith.constant 0 : index
    %6 = memref.load %arg3[%c0_0] : memref<2xf32, #tpu.memory_space<smem>>
    %c1_1 = arith.constant 1 : index
    %7 = memref.load %arg3[%c1_1] : memref<2xf32, #tpu.memory_space<smem>>
    %c0_2 = arith.constant 0 : index
    %8 = memref.load %arg4[%c0_2] : memref<12xf32, #tpu.memory_space<smem>>
    %c1_3 = arith.constant 1 : index
    %9 = memref.load %arg4[%c1_3] : memref<12xf32, #tpu.memory_space<smem>>
    %c2_4 = arith.constant 2 : index
    %10 = memref.load %arg4[%c2_4] : memref<12xf32, #tpu.memory_space<smem>>
    %c3_5 = arith.constant 3 : index
    %11 = memref.load %arg4[%c3_5] : memref<12xf32, #tpu.memory_space<smem>>
    %c4_6 = arith.constant 4 : index
    %12 = memref.load %arg4[%c4_6] : memref<12xf32, #tpu.memory_space<smem>>
    %c5_7 = arith.constant 5 : index
    %13 = memref.load %arg4[%c5_7] : memref<12xf32, #tpu.memory_space<smem>>
    %c6 = arith.constant 6 : index
    %14 = memref.load %arg4[%c6] : memref<12xf32, #tpu.memory_space<smem>>
    %c7 = arith.constant 7 : index
    %15 = memref.load %arg4[%c7] : memref<12xf32, #tpu.memory_space<smem>>
    %c8 = arith.constant 8 : index
    %16 = memref.load %arg4[%c8] : memref<12xf32, #tpu.memory_space<smem>>
    %c9 = arith.constant 9 : index
    %17 = memref.load %arg4[%c9] : memref<12xf32, #tpu.memory_space<smem>>
    %c10 = arith.constant 10 : index
    %18 = memref.load %arg4[%c10] : memref<12xf32, #tpu.memory_space<smem>>
    %c11 = arith.constant 11 : index
    %19 = memref.load %arg4[%c11] : memref<12xf32, #tpu.memory_space<smem>>
    %c0_8 = arith.constant 0 : index
    %20 = memref.load %arg5[%c0_8] : memref<4xf32, #tpu.memory_space<smem>>
    %c1_9 = arith.constant 1 : index
    %21 = memref.load %arg5[%c1_9] : memref<4xf32, #tpu.memory_space<smem>>
    %c2_10 = arith.constant 2 : index
    %22 = memref.load %arg5[%c2_10] : memref<4xf32, #tpu.memory_space<smem>>
    %c3_11 = arith.constant 3 : index
    %23 = memref.load %arg5[%c3_11] : memref<4xf32, #tpu.memory_space<smem>>
    %c0_12 = arith.constant 0 : index
    %c0_13 = arith.constant 0 : index
    %24 = vector.load %arg1[%c0_12, %c0_13] : memref<3x256xf32, #tpu.memory_space<vmem>>, vector<1x256xf32>
    %25 = vector.broadcast %0 : f32 to vector<1x256xf32>
    %26 = arith.mulf %24, %25 : vector<1x256xf32>
    %c1_14 = arith.constant 1 : index
    %c0_15 = arith.constant 0 : index
    %27 = vector.load %arg1[%c1_14, %c0_15] : memref<3x256xf32, #tpu.memory_space<vmem>>, vector<1x256xf32>
    %28 = vector.broadcast %2 : f32 to vector<1x256xf32>
    %29 = arith.mulf %27, %28 : vector<1x256xf32>
    %30 = arith.addf %26, %29 : vector<1x256xf32>
    %c2_16 = arith.constant 2 : index
    %c0_17 = arith.constant 0 : index
    %31 = vector.load %arg1[%c2_16, %c0_17] : memref<3x256xf32, #tpu.memory_space<vmem>>, vector<1x256xf32>
    %32 = vector.broadcast %4 : f32 to vector<1x256xf32>
    %33 = arith.mulf %31, %32 : vector<1x256xf32>
    %34 = arith.addf %30, %33 : vector<1x256xf32>
    %35 = vector.broadcast %6 : f32 to vector<1x256xf32>
    %36 = arith.addf %34, %35 : vector<1x256xf32>
    %c0_18 = arith.constant 0 : index
    %c0_19 = arith.constant 0 : index
    %37 = vector.load %arg1[%c0_18, %c0_19] : memref<3x256xf32, #tpu.memory_space<vmem>>, vector<1x256xf32>
    %38 = vector.broadcast %1 : f32 to vector<1x256xf32>
    %39 = arith.mulf %37, %38 : vector<1x256xf32>
    %c1_20 = arith.constant 1 : index
    %c0_21 = arith.constant 0 : index
    %40 = vector.load %arg1[%c1_20, %c0_21] : memref<3x256xf32, #tpu.memory_space<vmem>>, vector<1x256xf32>
    %41 = vector.broadcast %3 : f32 to vector<1x256xf32>
    %42 = arith.mulf %40, %41 : vector<1x256xf32>
    %43 = arith.addf %39, %42 : vector<1x256xf32>
    %c2_22 = arith.constant 2 : index
    %c0_23 = arith.constant 0 : index
    %44 = vector.load %arg1[%c2_22, %c0_23] : memref<3x256xf32, #tpu.memory_space<vmem>>, vector<1x256xf32>
    %45 = vector.broadcast %5 : f32 to vector<1x256xf32>
    %46 = arith.mulf %44, %45 : vector<1x256xf32>
    %47 = arith.addf %43, %46 : vector<1x256xf32>
    %48 = vector.broadcast %7 : f32 to vector<1x256xf32>
    %49 = arith.addf %47, %48 : vector<1x256xf32>
    %50 = arith.cmpf oge, %36, %49 : vector<1x256xf32>
    %51 = arith.extui %50 : vector<1x256xi1> to vector<1x256xi8>
    %c0_24 = arith.constant 0 : index
    %c0_25 = arith.constant 0 : index
    %52 = vector.load %arg7[%c0_24, %c0_25] : memref<1x256xi8, #tpu.memory_space<vmem>>, vector<1x256xi8>
    tpu.vector_store %arg7[%c0_24, %c0_25], %51 {strides = array<i32>} : memref<1x256xi8, #tpu.memory_space<vmem>>, vector<1x256xi8>,
    %53 = arith.extui %50 : vector<1x256xi1> to vector<1x256xi32>
    %54 = arith.sitofp %53 : vector<1x256xi32> to vector<1x256xf32>
    %c0_26 = arith.constant 0 : index
    %c0_27 = arith.constant 0 : index
    %55 = vector.load %arg1[%c0_26, %c0_27] : memref<3x256xf32, #tpu.memory_space<vmem>>, vector<1x256xf32>
    %56 = vector.broadcast %8 : f32 to vector<1x256xf32>
    %57 = arith.mulf %55, %56 : vector<1x256xf32>
    %c1_28 = arith.constant 1 : index
    %c0_29 = arith.constant 0 : index
    %58 = vector.load %arg1[%c1_28, %c0_29] : memref<3x256xf32, #tpu.memory_space<vmem>>, vector<1x256xf32>
    %59 = vector.broadcast %12 : f32 to vector<1x256xf32>
    %60 = arith.mulf %58, %59 : vector<1x256xf32>
    %61 = arith.addf %57, %60 : vector<1x256xf32>
    %c2_30 = arith.constant 2 : index
    %c0_31 = arith.constant 0 : index
    %62 = vector.load %arg1[%c2_30, %c0_31] : memref<3x256xf32, #tpu.memory_space<vmem>>, vector<1x256xf32>
    %63 = vector.broadcast %16 : f32 to vector<1x256xf32>
    %64 = arith.mulf %62, %63 : vector<1x256xf32>
    %65 = arith.addf %61, %64 : vector<1x256xf32>
    %66 = arith.mulf %54, %65 : vector<1x256xf32>
    %67 = vector.broadcast %20 : f32 to vector<1x256xf32>
    %68 = arith.addf %66, %67 : vector<1x256xf32>
    %c0_32 = arith.constant 0 : index
    %c0_33 = arith.constant 0 : index
    %69 = vector.load %arg6[%c0_32, %c0_33] : memref<4x256xf32, #tpu.memory_space<vmem>>, vector<1x256xf32>
    tpu.vector_store %arg6[%c0_32, %c0_33], %68 {strides = array<i32>} : memref<4x256xf32, #tpu.memory_space<vmem>>, vector<1x256xf32>,
    %c0_34 = arith.constant 0 : index
    %c0_35 = arith.constant 0 : index
    %70 = vector.load %arg1[%c0_34, %c0_35] : memref<3x256xf32, #tpu.memory_space<vmem>>, vector<1x256xf32>
    %71 = vector.broadcast %9 : f32 to vector<1x256xf32>
    %72 = arith.mulf %70, %71 : vector<1x256xf32>
    %c1_36 = arith.constant 1 : index
    %c0_37 = arith.constant 0 : index
    %73 = vector.load %arg1[%c1_36, %c0_37] : memref<3x256xf32, #tpu.memory_space<vmem>>, vector<1x256xf32>
    %74 = vector.broadcast %13 : f32 to vector<1x256xf32>
    %75 = arith.mulf %73, %74 : vector<1x256xf32>
    %76 = arith.addf %72, %75 : vector<1x256xf32>
    %c2_38 = arith.constant 2 : index
    %c0_39 = arith.constant 0 : index
    %77 = vector.load %arg1[%c2_38, %c0_39] : memref<3x256xf32, #tpu.memory_space<vmem>>, vector<1x256xf32>
    %78 = vector.broadcast %17 : f32 to vector<1x256xf32>
    %79 = arith.mulf %77, %78 : vector<1x256xf32>
    %80 = arith.addf %76, %79 : vector<1x256xf32>
    %81 = arith.mulf %54, %80 : vector<1x256xf32>
    %82 = vector.broadcast %21 : f32 to vector<1x256xf32>
    %83 = arith.addf %81, %82 : vector<1x256xf32>
    %c1_40 = arith.constant 1 : index
    %c0_41 = arith.constant 0 : index
    %84 = vector.load %arg6[%c1_40, %c0_41] : memref<4x256xf32, #tpu.memory_space<vmem>>, vector<1x256xf32>
    tpu.vector_store %arg6[%c1_40, %c0_41], %83 {strides = array<i32>} : memref<4x256xf32, #tpu.memory_space<vmem>>, vector<1x256xf32>,
    %c0_42 = arith.constant 0 : index
    %c0_43 = arith.constant 0 : index
    %85 = vector.load %arg1[%c0_42, %c0_43] : memref<3x256xf32, #tpu.memory_space<vmem>>, vector<1x256xf32>
    %86 = vector.broadcast %10 : f32 to vector<1x256xf32>
    %87 = arith.mulf %85, %86 : vector<1x256xf32>
    %c1_44 = arith.constant 1 : index
    %c0_45 = arith.constant 0 : index
    %88 = vector.load %arg1[%c1_44, %c0_45] : memref<3x256xf32, #tpu.memory_space<vmem>>, vector<1x256xf32>
    %89 = vector.broadcast %14 : f32 to vector<1x256xf32>
    %90 = arith.mulf %88, %89 : vector<1x256xf32>
    %91 = arith.addf %87, %90 : vector<1x256xf32>
    %c2_46 = arith.constant 2 : index
    %c0_47 = arith.constant 0 : index
    %92 = vector.load %arg1[%c2_46, %c0_47] : memref<3x256xf32, #tpu.memory_space<vmem>>, vector<1x256xf32>
    %93 = vector.broadcast %18 : f32 to vector<1x256xf32>
    %94 = arith.mulf %92, %93 : vector<1x256xf32>
    %95 = arith.addf %91, %94 : vector<1x256xf32>
    %96 = arith.mulf %54, %95 : vector<1x256xf32>
    %97 = vector.broadcast %22 : f32 to vector<1x256xf32>
    %98 = arith.addf %96, %97 : vector<1x256xf32>
    %c2_48 = arith.constant 2 : index
    %c0_49 = arith.constant 0 : index
    %99 = vector.load %arg6[%c2_48, %c0_49] : memref<4x256xf32, #tpu.memory_space<vmem>>, vector<1x256xf32>
    tpu.vector_store %arg6[%c2_48, %c0_49], %98 {strides = array<i32>} : memref<4x256xf32, #tpu.memory_space<vmem>>, vector<1x256xf32>,
    %c0_50 = arith.constant 0 : index
    %c0_51 = arith.constant 0 : index
    %100 = vector.load %arg1[%c0_50, %c0_51] : memref<3x256xf32, #tpu.memory_space<vmem>>, vector<1x256xf32>
    %101 = vector.broadcast %11 : f32 to vector<1x256xf32>
    %102 = arith.mulf %100, %101 : vector<1x256xf32>
    %c1_52 = arith.constant 1 : index
    %c0_53 = arith.constant 0 : index
    %103 = vector.load %arg1[%c1_52, %c0_53] : memref<3x256xf32, #tpu.memory_space<vmem>>, vector<1x256xf32>
    %104 = vector.broadcast %15 : f32 to vector<1x256xf32>
    %105 = arith.mulf %103, %104 : vector<1x256xf32>
    %106 = arith.addf %102, %105 : vector<1x256xf32>
    %c2_54 = arith.constant 2 : index
    %c0_55 = arith.constant 0 : index
    %107 = vector.load %arg1[%c2_54, %c0_55] : memref<3x256xf32, #tpu.memory_space<vmem>>, vector<1x256xf32>
    %108 = vector.broadcast %19 : f32 to vector<1x256xf32>
    %109 = arith.mulf %107, %108 : vector<1x256xf32>
    %110 = arith.addf %106, %109 : vector<1x256xf32>
    %111 = arith.mulf %54, %110 : vector<1x256xf32>
    %112 = vector.broadcast %23 : f32 to vector<1x256xf32>
    %113 = arith.addf %111, %112 : vector<1x256xf32>
    %c3_56 = arith.constant 3 : index
    %c0_57 = arith.constant 0 : index
    %114 = vector.load %arg6[%c3_56, %c0_57] : memref<4x256xf32, #tpu.memory_space<vmem>>, vector<1x256xf32>
    tpu.vector_store %arg6[%c3_56, %c0_57], %113 {strides = array<i32>} : memref<4x256xf32, #tpu.memory_space<vmem>>, vector<1x256xf32>,
    return
  }
  func.func @transform_0(%arg0: i32) -> (i32, i32) {
    %c0_i32 = arith.constant 0 : i32
    %c0_i32_0 = arith.constant 0 : i32
    return %c0_i32, %arg0 : i32, i32
  }
  func.func @transform_1(%arg0: i32) -> i32 {
    %c0_i32 = arith.constant 0 : i32
    %c0_i32_0 = arith.constant 0 : i32
    return %c0_i32 : i32
  }
  func.func @transform_2(%arg0: i32) -> i32 {
    %c0_i32 = arith.constant 0 : i32
    %c0_i32_0 = arith.constant 0 : i32
    return %c0_i32 : i32
  }
  func.func @transform_3(%arg0: i32) -> i32 {
    %c0_i32 = arith.constant 0 : i32
    %c0_i32_0 = arith.constant 0 : i32
    return %c0_i32 : i32
  }
  func.func @transform_4(%arg0: i32) -> i32 {
    %c0_i32 = arith.constant 0 : i32
    %c0_i32_0 = arith.constant 0 : i32
    return %c0_i32 : i32
  }
  func.func @transform_5(%arg0: i32) -> (i32, i32) {
    %c0_i32 = arith.constant 0 : i32
    %c0_i32_0 = arith.constant 0 : i32
    return %c0_i32, %arg0 : i32, i32
  }
  func.func @transform_6(%arg0: i32) -> (i32, i32) {
    %c0_i32 = arith.constant 0 : i32
    %c0_i32_0 = arith.constant 0 : i32
    return %c0_i32, %arg0 : i32, i32
  }
}

</mosaic_0001>

<bundles_post_ra>
// kernel: tpu_custom_call.1
= control target key start
LH: loop header
LB: loop body
LE: loop exit
PB: predicated region body
PF: predicated region fallthrough
CT: control target
= control target key end

     0   :  { %12 = vsyncpa [#allocation3], 0  ;;  %s584_s0 = inlined_call_operand.hbm [shape: f32[3,256], index: 0, kind: input, shape index: {}]   ;;  %s585_s1 = inlined_call_operand.hbm [shape: f32[6], index: 1, kind: input, shape index: {}]   ;;  %s586_s2 = inlined_call_operand.vmem [shape: f32[2], index: 2, kind: input, shape index: {}]   ;;  %s587_s3 = inlined_call_operand.vmem [shape: f32[12], index: 3, kind: input, shape index: {}]   ;;  %s588_s4 = inlined_call_operand.vmem [shape: f32[4], index: 4, kind: input, shape index: {}]   ;;  %s589_s5 = inlined_call_operand.hbm [shape: f32[4,256], index: 5, kind: output, shape index: {0}]   ;;  %s590_s6 = inlined_call_operand.hbm [shape: s8[1,256], index: 6, kind: output, shape index: {1}]  }
   0x1   :  { %13 = vsyncpa [#allocation5], 0 }
   0x2   :  { %14 = vsyncpa [#allocation6], 0 }
   0x3   :  { %15 = vsyncpa [#allocation10], 0 }
   0x4   :  { %16 = vsyncpa [#allocation4], 0  ;;  %s52_s23 = sshll.u32 %s587_s3, 4  ;;  %s53_s23 = int_to_ptr.vmem [resolvable:$true] %s52_s23 }
   0x5   :  { %17 = vsyncpa [#allocation14], 0  ;;  %s23_s26 = sshll.u32 %s584_s0, 4  ;;  %s442_s27 = smov [#allocation9]   ;;  %s24_s26 = int_to_ptr.hbm [resolvable:$true] %s23_s26 }
   0x6   :  { %55 = dma.vmem_to_smem %s53_s23, 16, %s442_s27, [#allocation10]  }
   0x7   :  { %s443_s28 = smov [#allocation2]   ;;  %s34_s8 = sshll.u32 %s585_s1, 4  ;;  %s35_s8 = int_to_ptr.hbm [resolvable:$true] %s34_s8 }
   0x8   :  { %s25_s29 = sshll.u32 %s443_s28, 4  ;;  %s43_s10 = sshll.u32 %s586_s2, 4  ;;  %s26_s29 = int_to_ptr.vmem [resolvable:$true] %s25_s29  ;;  %s44_s10 = int_to_ptr.vmem [resolvable:$true] %s43_s10 }
   0x9   :  { %28 = dma.hbm_to_vmem [thread:$0]  %s24_s26, 128, %s26_s29, [#allocation3]  }
   0xa   :  { %s444_s11 = smov [#allocation7]   ;;  %s445_s0 = smov [#allocation8]  }
   0xb   :  { %37 = dma.hbm_to_smem %s35_s8, 16, %s444_s11, [#allocation5]  }
   0xc   :  { %46 = dma.vmem_to_smem %s44_s10, 16, %s445_s0, [#allocation6]  }
   0xd   :  { %s61_s14 = sshll.u32 %s588_s4, 4  ;;  %s446_s15 = smov [#allocation11]   ;;  %s62_s14 = int_to_ptr.vmem [resolvable:$true] %s61_s14 }
   0xe   :  { %64 = dma.vmem_to_smem %s62_s14, 16, %s446_s15, [#allocation10]  }
   0xf   :  { %430 = dma.done.wait [#allocation3], 128  }
  0x10   :  { %431 = vsyncadd [#allocation3], 4294967168 }
  0x11   :  { %432 = dma.done.wait [#allocation5], 16  }
  0x12   :  { %433 = vsyncadd [#allocation5], 4294967280 }
  0x13   :  { %434 = dma.done.wait [#allocation6], 16  }
  0x14   :  { %435 = vsyncadd [#allocation6], 4294967280 }
  0x15   :  { %436 = dma.done.wait [#allocation10], 32  }
  0x16   :  { %437 = vsyncadd [#allocation10], 4294967264 }
  0x17   :  { %85 = sfence }
  0x18   :  { %s88_s1 = sld [smem:[#allocation7]]  ;;  %v112_v0 = vld [vmem:[#allocation2] ss:$4 sm:$0x3]  ;;  %v447_v18 = vmov 286326784   ;;  %v190_v38 = vlaneseq  ;;  %v448_v41 = vmov 0  }
  0x19   :  { %s279_s2 = sld [smem:[#allocation7 + $0x1]]  ;;  %v116_v2 = vld [vmem:[#allocation2 + $0x1] ss:$4 sm:$0x3]  ;;  %v140_v19 = vunpack.c.l.s4 %v447_v18  ;;  %v449_v43 = vmov 0.0   ;;  %vm160_vm4 = vcmask 1040384  }
  0x1a   :  { %s280_s16 = sld [smem:[#allocation7 + $0x2]]  ;;  %v121_v6 = vld [vmem:[#allocation2 + $0x2] ss:$4 sm:$0x3]  ;;  %vm539_vm2 = vcmp.lt.s32.totalorder %v190_v38, 256  ;;  %vm168_vm6 = vcmask 1041409  }
  0x1b   :  { %s281_s17 = sld [smem:[#allocation7 + $0x3]]  ;;  %v176_v20 = vld [vmem:[#allocation2] ss:$4 sm:$0x3]  ;;  %v141_v31 = vunpack.c.0.s8 %v140_v19  ;;  %vm166_vm5 = vsmask.f32 0 }
  0x1c   :  { %s282_s18 = sld [smem:[#allocation7 + $0x4]]  ;;  %v179_v23 = vld [vmem:[#allocation2 + $0x1] ss:$4 sm:$0x3]  ;;  %vm169_vm7 = vsmask.f32 1024  ;;  %vm564_vm8 = vmand %vm160_vm4, %vm166_vm5 }
  0x1d   :  { %s283_s19 = sld [smem:[#allocation7 + $0x5]]  ;;  %v183_v26 = vld [vmem:[#allocation2 + $0x2] ss:$4 sm:$0x3]  ;;  %s450_s0 = smov [#allocation12]   ;;  %vm568_vm9 = vmand %vm168_vm6, %vm169_vm7 }
  0x1e   :  { %s502_s4 = sld [smem:[#allocation8]]  ;;  %v113_v1 = vstv %s88_s1  ;;  %v195_v34 = vld [vmem:[#allocation2] ss:$4 sm:$0x3]  ;;  %s248_s12 = sshll.u32 %s450_s0, 4  ;;  %vm171_vm12 = vmor %vm568_vm9, %vm564_vm8  ;;  %s249_s12 = int_to_ptr.vmem [resolvable:$true] %s248_s12 }
  0x1f   :  { %s504_s20 = sld [smem:[#allocation8 + $0x1]]  ;;  %v114_v3 = vmul.f32 %v113_v1, %v112_v0  ;;  %v127_v4 = vstv %s279_s2  ;;  %v198_v36 = vld [vmem:[#allocation2 + $0x1] ss:$4 sm:$0x3]  ;;  %s250_s15 = sshll.u32 %s589_s5, 4  ;;  %s251_s15 = int_to_ptr.hbm [resolvable:$true] %s250_s15 }
  0x20   :  { %v117_v5 = vstv %s280_s16  ;;  %v128_v7 = vmul.f32 %v127_v4, %v112_v0  ;;  %s96_s21 = sld [smem:[#allocation9]]  ;;  %v202_v40 = vld [vmem:[#allocation2 + $0x2] ss:$4 sm:$0x3]  ;;  %s451_s1 = smov [#allocation13]  }
  0x21   :  { %v118_v8 = vmul.f32 %v117_v5, %v116_v2  ;;  %v129_v9 = vstv %s281_s17  ;;  %s288_s22 = sld [smem:[#allocation9 + $0x4]]  ;;  %v211_v51 = vld [vmem:[#allocation2] ss:$4 sm:$0x3]  ;;  %s259_s5 = sshll.u32 %s451_s1, 4  ;;  %s260_s5 = int_to_ptr.vmem [resolvable:$true] %s259_s5 }
  0x22   :  { %v122_v10 = vstv %s282_s18  ;;  %v130_v11 = vmul.f32 %v129_v9, %v116_v2  ;;  %s292_s23 = sld [smem:[#allocation9 + $0x8]]  ;;  %v214_v54 = vld [vmem:[#allocation2 + $0x1] ss:$4 sm:$0x3]  ;;  %s261_s17 = sshll.u32 %s590_s6, 4  ;;  %s262_s17 = int_to_ptr.hbm [resolvable:$true] %s261_s17 }
  0x23   :  { %v119_v12 = vadd.f32 %v118_v8, %v114_v3  ;;  %v123_v13 = vmul.f32 %v122_v10, %v121_v6  ;;  %v132_v14 = vstv %s283_s19  ;;  %s506_s24 = sld [smem:[#allocation11]]  ;;  %v218_v62 = vld [vmem:[#allocation2 + $0x2] ss:$4 sm:$0x3] }
  0x24   :  { %v125_v15 = vstv %s502_s4  ;;  %v131_v16 = vadd.f32 %v130_v11, %v128_v7  ;;  %v133_v17 = vmul.f32 %v132_v14, %v121_v6  ;;  %s509_s25 = sld [smem:[#allocation9 + $0x1]]  ;;  %v227_v5 = vld [vmem:[#allocation2] ss:$4 sm:$0x3] }
  0x25   :  { %v124_v21 = vadd.f32 %v123_v13, %v119_v12  ;;  %v135_v22 = vstv %s504_s20  ;;  %s512_s26 = sld [smem:[#allocation9 + $0x5]]  ;;  %v230_v6 = vld [vmem:[#allocation2 + $0x1] ss:$4 sm:$0x3] }
  0x26   :  { %v134_v24 = vadd.f32 %v133_v17, %v131_v16  ;;  %v177_v25 = vstv %s96_s21  ;;  %s514_s27 = sld [smem:[#allocation9 + $0x9]]  ;;  %v234_v13 = vld [vmem:[#allocation2 + $0x2] ss:$4 sm:$0x3] }
  0x27   :  { %v126_v27 = vadd.f32 %v125_v15, %v124_v21  ;;  %v178_v28 = vmul.f32 %v177_v25, %v176_v20  ;;  %v180_v29 = vstv %s288_s22  ;;  %s516_s28 = sld [smem:[#allocation11 + $0x1]] }
  0x28   :  { %v136_v30 = vadd.f32 %v135_v22, %v134_v24  ;;  %v181_v32 = vmul.f32 %v180_v29, %v179_v23  ;;  %v184_v33 = vstv %s292_s23  ;;  %s518_s29 = sld [smem:[#allocation9 + $0x2]] }
  0x29   :  { %v185_v35 = vmul.f32 %v184_v33, %v183_v26  ;;  %s520_s30 = sld [smem:[#allocation9 + $0x6]]  ;;  %v188_v52 = vstv %s506_s24 }
  0x2a   :  { %vm137_vm0 = vcmp.ge.f32.partialorder %v126_v27, %v136_v30  ;;  %v182_v37 = vadd.f32 %v181_v32, %v178_v28  ;;  %v196_v39 = vstv %s509_s25  ;;  %s523_s7 = sld [smem:[#allocation9 + $0xa]] }
  0x2b   :  { %v138_v42 = vsel %vm137_vm0, 1, %v448_v41  ;;  %v299_v44 = vsel %vm137_vm0, 1.0, %v449_v43  ;;  %v197_v45 = vmul.f32 %v196_v39, %v195_v34  ;;  %v199_v46 = vstv %s512_s26  ;;  %s527_s8 = sld [smem:[#allocation11 + $0x2]] }
  0x2c   :  { %v142_v47 = vperm.slane %v138_v42, %v141_v31  ;;  %v186_v48 = vadd.f32 %v185_v35, %v182_v37  ;;  %v200_v49 = vmul.f32 %v199_v46, %v198_v36  ;;  %v203_v50 = vstv %s514_s27  ;;  %s530_s9 = sld [smem:[#allocation9 + $0x3]]  ;;  %v172_v35 = vld [vmem:[#allocation13] sm:$0x3] }
  0x2d   :  { %v204_v53 = vmul.f32 %v203_v50, %v202_v40  ;;  %s533_s3 = sld [smem:[#allocation9 + $0x7]]  ;;  %v207_v3 = vstv %s516_s28 }
  0x2e   :  { %vm143_vm1 = vcmp.ne.s32.totalorder %v142_v47, 0  ;;  %v187_v55 = vmul.f32 %v299_v44, %v186_v48  ;;  %v201_v56 = vadd.f32 %v200_v49, %v197_v45  ;;  %v212_v57 = vstv %s518_s29  ;;  %s536_s10 = sld [smem:[#allocation9 + $0xb]] }
  0x2f   :  { %v144_v58 = vsel %vm143_vm1, 1, %v448_v41  ;;  %v213_v60 = vmul.f32 %v212_v57, %v211_v51  ;;  %v215_v61 = vstv %s520_s30  ;;  %s548_s11 = sld [smem:[#allocation11 + $0x3]] }
  0x30   :  { %v145_v63 = vpack.c.b16 %v144_v58, %v144_v58  ;;  %v189_v0 = vadd.f32 %v188_v52, %v187_v55  ;;  %v205_v1 = vadd.f32 %v204_v53, %v201_v56  ;;  %v216_v2 = vmul.f32 %v215_v61, %v214_v54 }
  0x31   :  { %v219_v4 = vstv %s523_s7  ;;  %v223_v18 = vstv %s527_s8 }
  0x32   :  { %v146_v7 = vpack.c.b8 %v145_v63, %v145_v63  ;;  %194 = vst.msk [vmem:[#allocation12] ss:$4 sm:$0x3] %vm539_vm2, %v189_v0  ;;  %v206_v8 = vmul.f32 %v299_v44, %v205_v1  ;;  %v217_v9 = vadd.f32 %v216_v2, %v213_v60  ;;  %v220_v10 = vmul.f32 %v219_v4, %v218_v62 }
  0x33   :  { %v228_v11 = vstv %s530_s9  ;;  %v231_v12 = vstv %s533_s3 }
  0x34   :  { %vm147_vm3 = vnez %v146_v7  ;;  %v208_v14 = vadd.f32 %v207_v3, %v206_v8  ;;  %v221_v15 = vadd.f32 %v220_v10, %v217_v9  ;;  %v229_v16 = vmul.f32 %v228_v11, %v227_v5 }
  0x35   :  { %v148_v17 = vsel %vm147_vm3, 16843009, %v448_v41  ;;  %v232_v19 = vmul.f32 %v231_v12, %v230_v6  ;;  %v235_v20 = vstv %s536_s10  ;;  %v239_v26 = vstv %s548_s11 }
  0x36   :  { %150 = vst [vmem:[#allocation1] ss:$9 sm:$0xff] %v148_v17  ;;  %v222_v21 = vmul.f32 %v299_v44, %v221_v15  ;;  %v236_v22 = vmul.f32 %v235_v20, %v234_v13 }
  0x37   :  { %210 = vst.msk [vmem:[#allocation12 + $0x1] ss:$4 sm:$0x3] %vm539_vm2, %v208_v14  ;;  %v233_v23 = vadd.f32 %v232_v19, %v229_v16 }
  0x38   :  { %v224_v24 = vadd.f32 %v223_v18, %v222_v21 }
  0x39   :  { %v237_v25 = vadd.f32 %v236_v22, %v233_v23 }
  0x3a   :  { %226 = vst.msk [vmem:[#allocation12 + $0x2] ss:$4 sm:$0x3] %vm539_vm2, %v224_v24 }
  0x3b   :  { %v238_v27 = vmul.f32 %v299_v44, %v237_v25 }
  0x3d   :  { %v151_v29 = vld [vmem:[#allocation1] sm:$0xff]  ;;  %v153_v30 = vld [vmem:[#allocation1 + $0x9] sm:$0xff]  ;;  %v240_v32 = vadd.f32 %v239_v26, %v238_v27 }
  0x3e   :  { %vm155_vm10 = vnez %v151_v29  ;;  %vm156_vm11 = vnez %v153_v30 }
  0x3f   :  { %v158_v33 = vsel %vm156_vm11, 16843009, %v448_v41  ;;  %242 = vst.msk [vmem:[#allocation12 + $0x3] ss:$4 sm:$0x3] %vm539_vm2, %v240_v32 }
  0x40   :  { %v159_v34 = vrot.slane %v158_v33, 7  ;;  %v157_v36 = vsel %vm155_vm10, 16843009, %v448_v41  ;;  %253 = dma.vmem_to_hbm [thread:$0]  %s249_s12, 128, %s251_s15, [#allocation4]  }
  0x42   :  { %v163_v37 = vsel %vm160_vm4, %v157_v36, %v159_v34 }
  0x43   :  { %v173_v38 = vsel %vm171_vm12, %v163_v37, %v172_v35 }
  0x44   :  { %174 = vst [vmem:[#allocation13] sm:$0x3] %v173_v38 }
  0x45   :  { %264 = dma.vmem_to_hbm [thread:$0]  %s260_s5, 32, %s262_s17, [#allocation14]  }
  0x46   :  { %438 = dma.done.wait [#allocation4], 128  }
  0x47   :  { %439 = vsyncadd [#allocation4], 4294967168 }
  0x48   :  { %440 = dma.done.wait [#allocation14], 32  }
  0x49   :  { %441 = vsyncadd [#allocation14], 4294967264 }
  0x4a   :  { %273 = vsyncpa [#allocation3], 1 }
  0x4b   :  { %274 = vsyncpa [#allocation4], 1 }
  0x4c   :  { %275 = vsyncpa [#allocation14], 1 }
  0x4d   :  { %276 = vsyncpa [#allocation5], 1 }
  0x4e   :  { %277 = vsyncpa [#allocation6], 1 }
  0x4f   :  { %278 = vsyncpa [#allocation10], 1 }

</bundles_post_ra>
